<compile_context>
chip_gen: v5e
topology: v5e:2x2
jax: 0.10.0
libtpu: 0.0.40
codegen_flags: <defaults>
</compile_context>

<pallas_src>
import functools

import jax
import jax.numpy as jnp
from jax.experimental import pallas as pl
from jax.experimental.pallas import tpu as pltpu

IGNORE_INDEX = -100


# ----------------------------------------------------------------------------- kernels


def cls_head_kernel(h_ref, w_ref, brow_ref, logits_ref, *, cast_dtype):
    """Inference path: logits [TILE_N, L] only (no CE epilogue).

    h_ref   : [TILE_N, H] f32 (cast to bf16 in-kernel)
    w_ref   : [L, H]      bf16 (resident)
    brow_ref: [1, L]      f32  (resident)
    logits  : [TILE_N, L] f32
    """
    h = h_ref[...].astype(cast_dtype)
    logits = jax.lax.dot_general(
        h, w_ref[...], dimension_numbers=(((1,), (1,)), ((), ())),
        preferred_element_type=jnp.float32,
    )
    logits_ref[...] = logits + brow_ref[...]


def cls_head_loss_kernel(h_ref, w_ref, brow_ref, bcol_ref, labels_ref,
                         logits_ref, part_ref, *, n_tokens, tile_n, cast_dtype):
    """Training path: logits [TILE_N, L] + per-tile CE partial sums.

    h_ref      : [TILE_N, H] f32 (cast to bf16 in-kernel)
    w_ref      : [L, H]      bf16
    brow_ref   : [1, L]      f32
    bcol_ref   : [L, 1]      f32
    labels_ref : [1, TILE_N] i32   (ignore_index = -100; tail garbage masked below)
    logits_ref : [TILE_N, L] f32   (native [N, L] layout -> no wrapper transpose)
    part_ref   : [8, 128]    f32   (row 0 = sum_nll, row 1 = sum_valid, rest 0; lane-broadcast)
    """
    h = h_ref[...].astype(cast_dtype)
    w = w_ref[...]

    # [TILE_N, L] logits for the output array (stored in the module's native layout).
    logits_nt = jax.lax.dot_general(
        h, w, dimension_numbers=(((1,), (1,)), ((), ())),
        preferred_element_type=jnp.float32,
    ) + brow_ref[...]
    logits_ref[...] = logits_nt

    # Lane-dense [L, TILE_N] logits for the CE epilogue (classes in sublanes, tokens in lanes).
    # MXU is massively under-utilized here, so the second tiny matmul is free and avoids a
    # risky in-kernel transpose.
    logits_t = jax.lax.dot_general(
        w, h, dimension_numbers=(((1,), (1,)), ((), ())),
        preferred_element_type=jnp.float32,
    ) + bcol_ref[...]

    lab = labels_ref[...]                                            # [1, TILE_N] i32
    base = pl.program_id(0) * tile_n
    lane = jax.lax.broadcasted_iota(jnp.int32, lab.shape, 1)
    in_bounds = (base + lane) < n_tokens                             # ragged-tail mask
    valid = jnp.logical_and(lab != IGNORE_INDEX, in_bounds)          # [1, TILE_N] bool

    # Cross-entropy in f32 (v5e has no bf16 VPU/EUP), fully lane-dense on [L, TILE_N]:
    m = jnp.max(logits_t, axis=0, keepdims=True)                     # [1, TILE_N]
    e = jnp.exp(logits_t - m)
    lse = m + jnp.log(jnp.sum(e, axis=0, keepdims=True))             # [1, TILE_N]

    cls_iota = jax.lax.broadcasted_iota(jnp.int32, logits_t.shape, 0)
    picked = jnp.sum(jnp.where(cls_iota == lab, logits_t, 0.0), axis=0, keepdims=True)

    # jnp.where (not multiply) so garbage/NaN in the masked tail cannot poison the sums.
    nll = jnp.where(valid, lse - picked, 0.0)

    row = jax.lax.broadcasted_iota(jnp.int32, part_ref.shape, 0)
    part_ref[...] = jnp.where(row == 0, jnp.sum(nll),
                              jnp.where(row == 1, jnp.sum(valid.astype(jnp.float32)), 0.0))


# ----------------------------------------------------------------------------- wrapper


def _pick_tile_n(n_tokens, hidden_size, num_labels, tile_n):
    """Tile size: big enough to amortize per-step overhead, small enough for VMEM, and
    split so the 'parallel' grid has >= 2 tiles (v7x has two TensorCores) when possible."""
    # Double-buffered f32 hidden tile + (lane-padded) f32 logits tile + labels, per token.
    per_token = 2 * hidden_size * 4 + 2 * max(num_labels, 128) * 4 + 8
    budget = 36 * 1024 * 1024                                   # leaves headroom in 64 MiB (v7x)
    cap = max(128, (budget // per_token) // 128 * 128)
    t = min(tile_n, cap)
    if n_tokens >= 2 * t:
        return t
    if n_tokens > 256:
        return ((n_tokens + 255) // 256) * 128                  # ~N/2, 128-aligned -> 2 tiles
    return n_tokens                                             # single tiny full-array tile


def cls_head_and_loss(hidden, weight, bias, labels=None, *,
                      tile_n=4096, compute_dtype=jnp.bfloat16):
    """hidden: [B, S, H] f32; weight: [L, H] (nn.Linear layout); bias: [L]; labels: [B, S]|None.

    Returns (loss_or_None, logits [B, S, L] f32).
    """
    B, S, H = hidden.shape
    L = weight.shape[0]
    N = B * S

    TILE_N = _pick_tile_n(N, H, L, tile_n)
    num_tiles = pl.cdiv(N, TILE_N)

    h2d = hidden.reshape(N, H)                              # f32; no cast/pad copy in HBM
    w = weight.astype(compute_dtype)                        # tiny, resident
    b_row = bias.reshape(1, L).astype(jnp.float32)
    b_col = bias.reshape(L, 1).astype(jnp.float32)

    in_specs_common = [
        pl.BlockSpec((TILE_N, H), lambda i: (i, 0)),        # hidden tile (auto double-buffered)
        pl.BlockSpec((L, H), lambda i: (0, 0)),             # weight (resident)
        pl.BlockSpec((1, L), lambda i: (0, 0)),             # bias row (resident)
    ]
    logits_spec = pl.BlockSpec((TILE_N, L), lambda i: (i, 0))
    logits_shape = jax.ShapeDtypeStruct((N, L), jnp.float32)

    cparams = pltpu.CompilerParams(dimension_semantics=("parallel",),
                                   vmem_limit_bytes=48 * 1024 * 1024)

    w_itemsize = jnp.dtype(compute_dtype).itemsize
    bytes_accessed = N * H * 4 + L * H * w_itemsize + N * L * 4
    if labels is not None:
        bytes_accessed += N * 4 + num_tiles * 8 * 128 * 4
    cost = pl.CostEstimate(
        flops=int((4 if labels is not None else 2) * N * H * L),
        transcendentals=int(N * (L + 1)) if labels is not None else 0,
        bytes_accessed=int(bytes_accessed),
    )

    if labels is not None:
        lab_row = labels.reshape(1, N).astype(jnp.int32)
        kern = functools.partial(cls_head_loss_kernel, n_tokens=N, tile_n=TILE_N,
                                 cast_dtype=compute_dtype)
        logits2d, partials = pl.pallas_call(
            kern,
            grid=(num_tiles,),
            in_specs=in_specs_common + [
                pl.BlockSpec((L, 1), lambda i: (0, 0)),              # bias col (resident)
                pl.BlockSpec((1, TILE_N), lambda i: (0, i)),         # labels tile
            ],
            out_specs=(logits_spec, pl.BlockSpec((8, 128), lambda i: (i, 0))),
            out_shape=(logits_shape,
                       jax.ShapeDtypeStruct((num_tiles * 8, 128), jnp.float32)),
            compiler_params=cparams,
            cost_estimate=cost,
        )(h2d, w, b_row, b_col, lab_row)
        # Each tile lane-broadcasts its scalar partials across 128 lanes of rows 0/1 of its block.
        p = partials.reshape(num_tiles, 8, 128)
        nll_total = jnp.sum(p[:, 0, 0])
        valid_total = jnp.sum(p[:, 1, 0])
        # Matches torch CrossEntropyLoss(reduction='mean'): 0/0 -> NaN if every label is ignored.
        loss = nll_total / valid_total
    else:
        kern = functools.partial(cls_head_kernel, cast_dtype=compute_dtype)
        logits2d = pl.pallas_call(
            kern,
            grid=(num_tiles,),
            in_specs=in_specs_common,
            out_specs=logits_spec,
            out_shape=logits_shape,
            compiler_params=cparams,
            cost_estimate=cost,
        )(h2d, w, b_row)
        loss = None

    logits = logits2d.reshape(B, S, L)                      # free reshape, no transpose
    return loss, logits


def model_for_sequence_labeling_forward(params, input_ids, attention_mask, labels=None):
    """Mirror of ModelForSequenceLabeling.forward -> dict(loss=..., logits=...)."""
    # TODO(synk): full BERT backbone (and the unused CRF member) not implemented in Pallas;
    # replaced by a deterministic embedding lookup masked by attention_mask as glue.
    hidden_states = params["embed"][input_ids] * attention_mask[..., None].astype(jnp.float32)
    loss, logits = cls_head_and_loss(hidden_states, params["cls_w"], params["cls_b"], labels)
    return dict(loss=loss, logits=logits)


# ----------------------------------------------------------------------------- reference


def _reference(hidden, weight, bias, labels):
    """Plain-JAX reference with the same bf16 cast of the matmul operands."""
    B, S, H = hidden.shape
    L = weight.shape[0]
    h_bf = hidden.reshape(-1, H).astype(jnp.bfloat16).astype(jnp.float32)
    w_bf = weight.astype(jnp.bfloat16).astype(jnp.float32)
    logits2d = jnp.dot(h_bf, w_bf.T, precision=jax.lax.Precision.HIGHEST) + bias
    logits = logits2d.reshape(B, S, L)
    loss = None
    if labels is not None:
        lab = labels.reshape(-1)
        valid = lab != IGNORE_INDEX
        safe = jnp.where(valid, lab, 0)
        logp = jax.nn.log_softmax(logits2d, axis=-1)
        picked = jnp.take_along_axis(logp, safe[:, None], axis=-1)[:, 0]
        loss = -jnp.sum(jnp.where(valid, picked, 0.0)) / jnp.sum(valid).astype(jnp.float32)
    return loss, logits


if __name__ == "__main__":
    # Small config consistent with the module: hidden_size=32, head_scale=1, num_labels=8
    B, S, H, L, V = 2, 8, 32, 8, 100

    key = jax.random.PRNGKey(0)
    k_embed, k_w, k_b, k_ids, k_lab, k_h2, k_lab2 = jax.random.split(key, 7)

    params = {
        "embed": jax.random.normal(k_embed, (V, H), dtype=jnp.float32) * 0.1,
        "cls_w": jax.random.normal(k_w, (L, H), dtype=jnp.float32) * 0.05,  # [out, in]
        "cls_b": jax.random.normal(k_b, (L,), dtype=jnp.float32) * 0.01,
    }

    input_ids = jax.random.randint(k_ids, (B, S), 0, V, dtype=jnp.int32)
    attention_mask = jnp.ones((B, S), dtype=jnp.int32)
    labels = jax.random.randint(k_lab, (B, S), 0, L, dtype=jnp.int32)
    # Exercise ignore_index=-100 handling.
    labels = labels.at[0, 0].set(IGNORE_INDEX).at[1, 3].set(IGNORE_INDEX)

    out = model_for_sequence_labeling_forward(params, input_ids, attention_mask, labels)
    logits = jax.block_until_ready(out["logits"])
    loss = jax.block_until_ready(out["loss"])

    # Inference path (no labels -> no CE work).
    out_inf = model_for_sequence_labeling_forward(params, input_ids, attention_mask, None)
    logits_inf = jax.block_until_ready(out_inf["logits"])
    assert out_inf["loss"] is None

    hidden_ref = params["embed"][input_ids] * attention_mask[..., None].astype(jnp.float32)
    loss_ref, logits_ref = _reference(hidden_ref, params["cls_w"], params["cls_b"], labels)

    assert logits.shape == (B, S, L)
    assert jnp.allclose(logits, logits_ref, atol=1e-4, rtol=1e-4), "logits mismatch"
    assert jnp.allclose(logits_inf, logits_ref, atol=1e-4, rtol=1e-4), "inference logits mismatch"
    assert jnp.allclose(loss, loss_ref, atol=1e-4, rtol=1e-4), "loss mismatch"

    # Ragged / multi-tile path: N=300 -> TILE_N=256, 2 tiles ('parallel' grid feeds both v7x
    # TensorCores), 44-token masked tail exercises the no-pad boundary handling.
    B2, S2 = 3, 100
    hidden2 = jax.random.normal(k_h2, (B2, S2, H), dtype=jnp.float32) * 0.1
    labels2 = jax.random.randint(k_lab2, (B2, S2), 0, L, dtype=jnp.int32)
    labels2 = labels2.at[0, 0].set(IGNORE_INDEX).at[2, 99].set(IGNORE_INDEX)

    loss2, logits2 = cls_head_and_loss(hidden2, params["cls_w"], params["cls_b"], labels2)
    logits2 = jax.block_until_ready(logits2)
    loss2 = jax.block_until_ready(loss2)
    loss2_ref, logits2_ref = _reference(hidden2, params["cls_w"], params["cls_b"], labels2)

    assert logits2.shape == (B2, S2, L)
    assert jnp.allclose(logits2, logits2_ref, atol=1e-4, rtol=1e-4), "ragged logits mismatch"
    assert jnp.allclose(loss2, loss2_ref, atol=1e-4, rtol=1e-4), "ragged loss mismatch"

    print("KERNEL_OK")
</pallas_src>

<mosaic_0001>
module attributes {stable_mosaic.version = 11 : i64} {
  func.func @cls_head_loss_kernel(%arg0: i32, %arg1: memref<16x32xf32, #tpu.memory_space<vmem>>, %arg2: memref<8x32xbf16, #tpu.memory_space<vmem>>, %arg3: memref<1x8xf32, #tpu.memory_space<vmem>>, %arg4: memref<8x1xf32, #tpu.memory_space<vmem>>, %arg5: memref<1x16xi32, #tpu.memory_space<vmem>>, %arg6: memref<16x8xf32, #tpu.memory_space<vmem>>, %arg7: memref<8x128xf32, #tpu.memory_space<vmem>>) attributes {dimension_semantics = [#tpu.dimension_semantics<parallel>], iteration_bounds = array<i64: 1>, scalar_prefetch = 0 : i64, scratch_operands = 0 : i64, tpu.core_type = #tpu.core_type<tc>, window_params = [{transform_indices = @transform_0, window_bounds = array<i64: 16, 32>}, {pipeline_mode = #tpu.pipeline_mode<synchronous>, transform_indices = @transform_1, window_bounds = array<i64: 8, 32>}, {pipeline_mode = #tpu.pipeline_mode<synchronous>, transform_indices = @transform_2, window_bounds = array<i64: 1, 8>}, {pipeline_mode = #tpu.pipeline_mode<synchronous>, transform_indices = @transform_3, window_bounds = array<i64: 8, 1>}, {transform_indices = @transform_4, window_bounds = array<i64: 1, 16>}, {transform_indices = @transform_5, window_bounds = array<i64: 16, 8>}, {transform_indices = @transform_6, window_bounds = array<i64: 8, 128>}]} {
    %c0 = arith.constant 0 : index
    %c0_0 = arith.constant 0 : index
    %0 = vector.load %arg1[%c0, %c0_0] : memref<16x32xf32, #tpu.memory_space<vmem>>, vector<16x32xf32>
    %1 = arith.truncf %0 : vector<16x32xf32> to vector<16x32xbf16>
    %c0_1 = arith.constant 0 : index
    %c0_2 = arith.constant 0 : index
    %2 = vector.load %arg2[%c0_1, %c0_2] : memref<8x32xbf16, #tpu.memory_space<vmem>>, vector<8x32xbf16>
    %cst = arith.constant dense<0.000000e+00> : vector<16x8xf32>
    %3 = tpu.matmul %1, %2, %cst {dimension_numbers = #tpu.dot_dimension_numbers<[1], [1], [0], [0], [0, 0, 1, 0], [], []>} : vector<16x32xbf16>, vector<8x32xbf16>, vector<16x8xf32> -> vector<16x8xf32>
    %c0_3 = arith.constant 0 : index
    %c0_4 = arith.constant 0 : index
    %4 = vector.load %arg3[%c0_3, %c0_4] : memref<1x8xf32, #tpu.memory_space<vmem>>, vector<1x8xf32>
    %5 = vector.broadcast %4 : vector<1x8xf32> to vector<16x8xf32>
    %6 = arith.addf %3, %5 : vector<16x8xf32>
    %c0_5 = arith.constant 0 : index
    %c0_6 = arith.constant 0 : index
    %7 = vector.load %arg6[%c0_5, %c0_6] : memref<16x8xf32, #tpu.memory_space<vmem>>, vector<16x8xf32>
    tpu.vector_store %arg6[%c0_5, %c0_6], %6 {strides = array<i32>} : memref<16x8xf32, #tpu.memory_space<vmem>>, vector<16x8xf32>,
    %cst_7 = arith.constant dense<0.000000e+00> : vector<8x16xf32>
    %8 = tpu.matmul %2, %1, %cst_7 {dimension_numbers = #tpu.dot_dimension_numbers<[1], [1], [0], [0], [0, 0, 1, 0], [], []>} : vector<8x32xbf16>, vector<16x32xbf16>, vector<8x16xf32> -> vector<8x16xf32>
    %c0_8 = arith.constant 0 : index
    %c0_9 = arith.constant 0 : index
    %9 = vector.load %arg4[%c0_8, %c0_9] : memref<8x1xf32, #tpu.memory_space<vmem>>, vector<8x1xf32>
    %10 = vector.broadcast %9 : vector<8x1xf32> to vector<8x16xf32>
    %11 = arith.addf %8, %10 : vector<8x16xf32>
    %c0_10 = arith.constant 0 : index
    %c0_11 = arith.constant 0 : index
    %12 = vector.load %arg5[%c0_10, %c0_11] : memref<1x16xi32, #tpu.memory_space<vmem>>, vector<1x16xi32>
    %c16_i32 = arith.constant 16 : i32
    %13 = arith.muli %arg0, %c16_i32 : i32
    %14 = tpu.iota {dimensions = array<i32: 1>} : vector<1x16xi32>
    %15 = vector.broadcast %13 : i32 to vector<1x16xi32>
    %16 = arith.addi %15, %14 : vector<1x16xi32>
    %c16_i32_12 = arith.constant 16 : i32
    %17 = vector.broadcast %c16_i32_12 : i32 to vector<1x16xi32>
    %18 = arith.cmpi slt, %16, %17 : vector<1x16xi32>
    %c-100_i32 = arith.constant -100 : i32
    %19 = vector.broadcast %c-100_i32 : i32 to vector<1x16xi32>
    %20 = arith.cmpi ne, %12, %19 : vector<1x16xi32>
    %21 = arith.andi %20, %18 : vector<1x16xi1>
    %cst_13 = arith.constant dense<0xFF800000> : vector<16xf32>
    %22 = vector.multi_reduction <maximumf>, %11, %cst_13 [0] : vector<8x16xf32> to vector<16xf32>
    %23 = vector.shape_cast %22 : vector<16xf32> to vector<1x16xf32>
    %24 = vector.broadcast %23 : vector<1x16xf32> to vector<8x16xf32>
    %25 = arith.subf %11, %24 : vector<8x16xf32>
    %26 = math.exp %25 : vector<8x16xf32>
    %cst_14 = arith.constant dense<0.000000e+00> : vector<16xf32>
    %27 = vector.multi_reduction <add>, %26, %cst_14 [0] : vector<8x16xf32> to vector<16xf32>
    %28 = vector.shape_cast %27 : vector<16xf32> to vector<1x16xf32>
    %29 = math.log %28 : vector<1x16xf32>
    %30 = arith.addf %23, %29 : vector<1x16xf32>
    %31 = tpu.iota {dimensions = array<i32: 0>} : vector<8x16xi32>
    %32 = vector.broadcast %12 : vector<1x16xi32> to vector<8x16xi32>
    %33 = arith.cmpi eq, %31, %32 : vector<8x16xi32>
    %cst_15 = arith.constant 0.000000e+00 : f32
    %34 = vector.broadcast %cst_15 : f32 to vector<8x16xf32>
    %35 = arith.select %33, %11, %34 : vector<8x16xi1>, vector<8x16xf32>
    %cst_16 = arith.constant dense<0.000000e+00> : vector<16xf32>
    %36 = vector.multi_reduction <add>, %35, %cst_16 [0] : vector<8x16xf32> to vector<16xf32>
    %37 = vector.shape_cast %36 : vector<16xf32> to vector<1x16xf32>
    %38 = arith.subf %30, %37 : vector<1x16xf32>
    %cst_17 = arith.constant 0.000000e+00 : f32
    %39 = vector.broadcast %cst_17 : f32 to vector<1x16xf32>
    %40 = arith.select %21, %38, %39 : vector<1x16xi1>, vector<1x16xf32>
    %41 = tpu.iota {dimensions = array<i32: 0>} : vector<8x128xi32>
    %c0_i32 = arith.constant 0 : i32
    %42 = vector.broadcast %c0_i32 : i32 to vector<8x128xi32>
    %43 = arith.cmpi eq, %41, %42 : vector<8x128xi32>
    %44 = vector.shape_cast %40 : vector<1x16xf32> to vector<1x1x16xf32>
    %cst_18 = arith.constant dense<0.000000e+00> : vector<1xf32>
    %45 = vector.multi_reduction <add>, %44, %cst_18 [1, 2] : vector<1x1x16xf32> to vector<1xf32>
    %46 = vector.shape_cast %45 : vector<1xf32> to vector<1x1x1xf32>
    %47 = vector.extract %46[0, 0, 0] : f32 from vector<1x1x1xf32>
    %c1_i32 = arith.constant 1 : i32
    %48 = vector.broadcast %c1_i32 : i32 to vector<8x128xi32>
    %49 = arith.cmpi eq, %41, %48 : vector<8x128xi32>
    %50 = arith.extui %21 : vector<1x16xi1> to vector<1x16xi32>
    %51 = arith.sitofp %50 : vector<1x16xi32> to vector<1x16xf32>
    %52 = vector.shape_cast %51 : vector<1x16xf32> to vector<1x1x16xf32>
    %cst_19 = arith.constant dense<0.000000e+00> : vector<1xf32>
    %53 = vector.multi_reduction <add>, %52, %cst_19 [1, 2] : vector<1x1x16xf32> to vector<1xf32>
    %54 = vector.shape_cast %53 : vector<1xf32> to vector<1x1x1xf32>
    %55 = vector.extract %54[0, 0, 0] : f32 from vector<1x1x1xf32>
    %cst_20 = arith.constant 0.000000e+00 : f32
    %56 = vector.broadcast %55 : f32 to vector<8x128xf32>
    %57 = vector.broadcast %cst_20 : f32 to vector<8x128xf32>
    %58 = arith.select %49, %56, %57 : vector<8x128xi1>, vector<8x128xf32>
    %59 = vector.broadcast %47 : f32 to vector<8x128xf32>
    %60 = arith.select %43, %59, %58 : vector<8x128xi1>, vector<8x128xf32>
    %c0_21 = arith.constant 0 : index
    %c0_22 = arith.constant 0 : index
    %61 = vector.load %arg7[%c0_21, %c0_22] : memref<8x128xf32, #tpu.memory_space<vmem>>, vector<8x128xf32>
    tpu.vector_store %arg7[%c0_21, %c0_22], %60 {strides = array<i32>} : memref<8x128xf32, #tpu.memory_space<vmem>>, vector<8x128xf32>,
    return
  }
  func.func @transform_0(%arg0: i32) -> (i32, i32) {
    %c0_i32 = arith.constant 0 : i32
    %c0_i32_0 = arith.constant 0 : i32
    return %arg0, %c0_i32 : i32, i32
  }
  func.func @transform_1(%arg0: i32) -> (i32, i32) {
    %c0_i32 = arith.constant 0 : i32
    %c0_i32_0 = arith.constant 0 : i32
    %c0_i32_1 = arith.constant 0 : i32
    return %c0_i32, %c0_i32_0 : i32, i32
  }
  func.func @transform_2(%arg0: i32) -> (i32, i32) {
    %c0_i32 = arith.constant 0 : i32
    %c0_i32_0 = arith.constant 0 : i32
    %c0_i32_1 = arith.constant 0 : i32
    return %c0_i32, %c0_i32_0 : i32, i32
  }
  func.func @transform_3(%arg0: i32) -> (i32, i32) {
    %c0_i32 = arith.constant 0 : i32
    %c0_i32_0 = arith.constant 0 : i32
    %c0_i32_1 = arith.constant 0 : i32
    return %c0_i32, %c0_i32_0 : i32, i32
  }
  func.func @transform_4(%arg0: i32) -> (i32, i32) {
    %c0_i32 = arith.constant 0 : i32
    %c0_i32_0 = arith.constant 0 : i32
    return %c0_i32, %arg0 : i32, i32
  }
  func.func @transform_5(%arg0: i32) -> (i32, i32) {
    %c0_i32 = arith.constant 0 : i32
    %c0_i32_0 = arith.constant 0 : i32
    return %arg0, %c0_i32 : i32, i32
  }
  func.func @transform_6(%arg0: i32) -> (i32, i32) {
    %c0_i32 = arith.constant 0 : i32
    %c0_i32_0 = arith.constant 0 : i32
    return %arg0, %c0_i32 : i32, i32
  }
}

</mosaic_0001>

<bundles_post_ra>
// kernel: tpu_custom_call.1
= control target key start
LH: loop header
LB: loop body
LE: loop exit
PB: predicated region body
PF: predicated region fallthrough
CT: control target
= control target key end

     0   :  { %12 = vsyncpa [#allocation3], 0  ;;  %s348_s0 = inlined_call_operand.hbm [shape: f32[16,32], index: 0, kind: input, shape index: {}]   ;;  %s349_s1 = inlined_call_operand.vmem [shape: bf16[8,32], index: 1, kind: input, shape index: {}]   ;;  %s350_s2 = inlined_call_operand.vmem [shape: f32[1,8], index: 2, kind: input, shape index: {}]   ;;  %s351_s3 = inlined_call_operand.vmem [shape: f32[8,1], index: 3, kind: input, shape index: {}]   ;;  %s352_s4 = inlined_call_operand.vmem [shape: s32[1,16], index: 4, kind: input, shape index: {}]   ;;  %s353_s5 = inlined_call_operand.vmem [shape: f32[16,8], index: 5, kind: output, shape index: {0}]   ;;  %s354_s6 = inlined_call_operand.hbm [shape: f32[8,128], index: 6, kind: output, shape index: {1}]  }
   0x1   :  { %13 = vsyncpa [#allocation4], 0  ;;  %s18_s23 = sshll.u32 %s348_s0, 4  ;;  %s258_s24 = smov [#allocation2]   ;;  %s19_s23 = int_to_ptr.hbm [resolvable:$true] %s18_s23 }
   0x2   :  { %s20_s25 = sshll.u32 %s258_s24, 4  ;;  %s259_s26 = smov 128   ;;  %s21_s25 = int_to_ptr.vmem [resolvable:$true] %s20_s25 }
   0x3   :  { %s260_s27 = smov 8  }
   0x4   :  { %26 = dma.hbm_to_vmem [thread:$0]  %s19_s23, 256, %s21_s25, [#allocation3], %s259_s26, %s259_s26, %s260_s27  }
   0x5   :  { %254 = dma.done.wait [#allocation3], 256  }
   0x6   :  { %255 = vsyncadd [#allocation3], 4294967040  ;;  %v261_v0 = vmov 0   ;;  %v40_v1 = vld [vmem:[#allocation2] sm:$0xff]  ;;  %v41_v2 = vld [vmem:[#allocation2 + $0x8] sm:$0xff]  ;;  %vm48_vm0 = vcmask 261120   ;;  %v93_v8 = vlaneseq }
   0x7   :  { %199 = vset.pattern.permute.xlu0 %v261_v0  ;;  %v42_v3 = vpack.c.bf16 %v41_v2, %v40_v1  ;;  %v72_v4 = vld [vmem:[%s351_s3] sm:$0xff]  ;;  %vm100_vm1 = vcmask 130048   ;;  %vm136_vm4 = vcmask 122880   ;;  %v262_v16 = vmov 0.0   ;;  %s174_s17 = sshll.u32 %s354_s6, 4  ;;  %s175_s17 = int_to_ptr.hbm [resolvable:$true] %s174_s17 }
   0x8   :  { %75 = vperm.xlu0 %199, %v72_v4   ;;  %v43_v6 = vld [vmem:[%s349_s1] sm:$0xf]  ;;  %v94_v11 = vand.u32 127, %v93_v8  ;;  %v321_v26 = vshrl.u32 %v93_v8, 7  ;;  %vm69_vm7 = vcmask 64512  }
   0x9   :  { %v50_v5 = vsel %vm48_vm0, %v42_v3, 0  ;;  %v91_v10 = vld [vmem:[%s352_s4] sm:$0x1]  ;;  %v53_v30 = vsel %vm48_vm0, %v43_v6, 0 }
   0xa   :  { %85 = vmatpush.bf16.xpose.msra.mxu1 %v50_v5  ;;  %vm98_vm2 = vcmp.ne.s32.totalorder %v91_v10, 4294967196  ;;  %vm97_vm3 = vcmp.lt.s32.totalorder %v94_v11, 16  ;;  %v200_v27 = vld [vmem:[%s352_s4] ss:$0 sm:$0xff]  ;;  %62 = vmatpush.bf16.xpose.msra.mxu0 %v53_v30  ;;  %vm147_vm8 = vcmp.eq.s32.totalorder %v321_v26, 1  ;;  %vm135_vm9 = vcmp.eq.s32.totalorder %v321_v26, 0 }
   0xb   :  { %vm314_vm5 = vmand %vm98_vm2, %vm97_vm3  ;;  %vm124_vm6 = vcmp.eq.s32.totalorder %v321_v26, %v200_v27  ;;  %v201_v52 = vld [vmem:[%s350_s2] ss:$0 sm:$0xff]  ;;  %s263_s2 = smov [#allocation5]  }
   0xc   :  { %v188_v17 = vsel %vm314_vm5, 1.0, %v262_v16  ;;  %s172_s14 = sshll.u32 %s263_s2, 4  ;;  %s173_s14 = int_to_ptr.vmem [resolvable:$true] %s172_s14 }
   0xd   :  { %v150_v18 = vsel %vm136_vm4, %v188_v17, 0.0 }
   0xe   :  { %151 = vadd.xlane.f32.xlu1 %v150_v18 }
  0x11   :  { %187 = vmatmul.msk.bf16.vlgmr.msra.gmra.mxu1 %vm48_vm0, %v43_v6  ;;  %186 = vmatmul.msk.bf16.vlgmr.msra.gmra.mxu0 %vm48_vm0, %v42_v3 }
  0x7a   :  { %v76_v7 = vpop.permute.xlu0 %75 }
  0x81   :  { %v152_v55 = vpop.xlane.xlu1 %151 }
  0x82   :  { %v153_v56 = vrot.slane %v152_v55, 4 }
  0x84   :  { %v154_v59 = vadd.f32 %v153_v56, %v152_v55 }
  0x86   :  { %v155_v60 = vrot.slane %v154_v59, 2 }
  0x88   :  { %v156_v0 = vadd.f32 %v155_v60, %v154_v59 }
  0x8a   :  { %v157_v3 = vrot.slane %v156_v0, 1 }
  0x8c   :  { %v158_v6 = vadd.f32 %v157_v3, %v156_v0 }
  0x8e   :  { %v87_v9 = vpop.f32.mrf.mxu1  ;;  %v64_v53 = vpop.f32.mrf.mxu0 }
  0x8f   :  { %v88_v12 = vadd.f32 %v87_v9, %v76_v7  ;;  %v65_v54 = vadd.f32 %v201_v52, %v64_v53 }
  0x91   :  { %v101_v13 = vsel %vm100_vm1, %v88_v12, -inf  ;;  %v125_v29 = vsel %vm124_vm6, %v88_v12, 0.0  ;;  %70 = vst.msk [vmem:[%s353_s5] sm:$0xff] %vm69_vm7, %v65_v54 }
  0x92   :  { %v102_v15 = vrot.slane %v101_v13, 4  ;;  %v126_v32 = vsel %vm100_vm1, %v125_v29, 0.0 }
  0x93   :  { %v127_v35 = vrot.slane %v126_v32, 4 }
  0x94   :  { %v103_v19 = vmax.f32 %v101_v13, %v102_v15 }
  0x95   :  { %v128_v38 = vadd.f32 %v127_v35, %v126_v32 }
  0x96   :  { %v104_v20 = vrot.slane %v103_v19, 2  ;;  %v89_v21 = vpop.f32.mrf.mxu1  ;;  %v66_v57 = vpop.f32.mrf.mxu0 }
  0x97   :  { %v129_v41 = vrot.slane %v128_v38, 2  ;;  %v67_v58 = vadd.f32 %v201_v52, %v66_v57 }
  0x98   :  { %v105_v22 = vmax.f32 %v103_v19, %v104_v20 }
  0x99   :  { %v130_v43 = vadd.f32 %v129_v41, %v128_v38  ;;  %71 = vst.msk [vmem:[%s353_s5 + $0x8] sm:$0xff] %vm69_vm7, %v67_v58 }
  0x9a   :  { %v106_v23 = vrot.slane %v105_v22, 1 }
  0x9b   :  { %v131_v44 = vrot.slane %v130_v43, 1 }
  0x9c   :  { %v107_v24 = vmax.f32 %v105_v22, %v106_v23 }
  0x9d   :  { %v132_v48 = vadd.f32 %v131_v44, %v130_v43 }
  0x9e   :  { %v108_v25 = vsub.f32 %v88_v12, %v107_v24 }
  0xa0   :  { %v109_v28 = vmul.f32 1.442695, %v108_v25 }
  0xa2   :  { %202 = vpow2.f32 %v109_v28 }
  0xa8   :  { %v203_v31 = vpop.eup %202 }
  0xa9   :  { %v111_v33 = vsel %vm100_vm1, %v203_v31, 0.0 }
  0xaa   :  { %v112_v34 = vrot.slane %v111_v33, 4 }
  0xac   :  { %v113_v36 = vadd.f32 %v112_v34, %v111_v33 }
  0xae   :  { %v114_v37 = vrot.slane %v113_v36, 2 }
  0xb0   :  { %v115_v39 = vadd.f32 %v114_v37, %v113_v36 }
  0xb2   :  { %v116_v40 = vrot.slane %v115_v39, 1 }
  0xb4   :  { %v117_v42 = vadd.f32 %v116_v40, %v115_v39 }
  0xb6   :  { %204 = vlog2.f32 %v117_v42 }
  0xbc   :  { %v205_v45 = vpop.eup %204 }
  0xbd   :  { %v119_v46 = vmul.f32 0.6931472, %v205_v45 }
  0xbf   :  { %v120_v47 = vadd.f32 %v119_v46, %v107_v24 }
  0xc1   :  { %v133_v49 = vsub.f32 %v120_v47, %v132_v48 }
  0xc3   :  { %v134_v50 = vsel %vm314_vm5, %v133_v49, 0.0 }
  0xc4   :  { %v137_v51 = vsel %vm136_vm4, %v134_v50, 0.0 }
  0xc5   :  { %138 = vadd.xlane.f32.xlu0 %v137_v51 }
 0x138   :  { %v139_v61 = vpop.xlane.xlu0 %138 }
 0x139   :  { %v140_v62 = vrot.slane %v139_v61, 4 }
 0x13b   :  { %v141_v63 = vadd.f32 %v140_v62, %v139_v61 }
 0x13d   :  { %v142_v1 = vrot.slane %v141_v63, 2 }
 0x13f   :  { %v143_v2 = vadd.f32 %v142_v1, %v141_v63 }
 0x141   :  { %v144_v4 = vrot.slane %v143_v2, 1 }
 0x143   :  { %v145_v5 = vadd.f32 %v144_v4, %v143_v2 }
 0x145   :  { %189 = vpush %v145_v5 }
 0x146   :  { %191 = vpush %v158_v6 }
 0x176   :  { %s190_s15 = spop %189 }
 0x177   :  { %v162_v7 = vstv %s190_s15  ;;  %s192_s18 = spop %191 }
 0x178   :  { %v160_v8 = vstv %s192_s18 }
 0x179   :  { %v161_v9 = vsel %vm147_vm8, %v160_v8, 0.0 }
 0x17a   :  { %v163_v10 = vsel %vm135_vm9, %v162_v7, %v161_v9 }
 0x17b   :  { %164 = vst [vmem:[#allocation5] sm:$0xff] %v163_v10 }
 0x17c   :  { %177 = dma.vmem_to_hbm [thread:$0]  %s173_s14, 128, %s175_s17, [#allocation4]  }
 0x17d   :  { %256 = dma.done.wait [#allocation4], 128  }
 0x17e   :  { %257 = vsyncadd [#allocation4], 4294967168 }
 0x17f   :  { %184 = vsyncpa [#allocation3], 1 }
 0x180   :  { %185 = vsyncpa [#allocation4], 1 }

</bundles_post_ra>
